<compile_context>
chip_gen: v5e
topology: v5e:2x2
jax: 0.10.0
libtpu: 0.0.40
codegen_flags: <defaults>
</compile_context>

<pallas_src>
import math

import jax
import jax.numpy as jnp
from jax.experimental import pallas as pl
from jax.experimental.pallas import tpu as pltpu


def _mlp_kernel(x_ref, *rest):
    """Whole MLP hot path for one lane-major tile of points (MXU + VPU)."""
    w_refs = rest[:-1]
    o_ref = rest[-1]
    n_layers = len(w_refs)

    h = x_ref[...]                                    # [d_in, tile_n], bf16/f32
    for li, w_ref in enumerate(w_refs):
        # [d_out_i, d_in_i] @ [d_in_i, tile_n] -> f32 [d_out_i, tile_n]
        h = jnp.dot(w_ref[...], h, preferred_element_type=jnp.float32)
        if li < n_layers - 1:                         # ReLU on all but the last
            h = jnp.maximum(h, 0.0).astype(x_ref.dtype)
    o_ref[...] = h.astype(o_ref.dtype)


def _round_up(a, b):
    return ((a + b - 1) // b) * b


def mlp_forward(x, weights, tile_n=4096, operand_dtype=jnp.bfloat16):
    """Run the _MLP forward pass.

    x:       [N, n_input_dims] (any float dtype; module casts to f32)
    weights: list of [d_out, d_in] float32 arrays (PyTorch Linear layout,
             bias-free)
    returns: [N, n_output_dims] float32
    """
    N, d_in = x.shape
    d_out = weights[-1].shape[0]

    # Tile along the point (lane) axis. Keep the tile a multiple of 128 lanes
    # and don't let a tiny N force a huge padded launch.
    tile_n = max(128, min(_round_up(tile_n, 128), _round_up(N, 128)))
    n_pad = _round_up(N, tile_n)
    grid = (n_pad // tile_n,)

    # One transpose + pad + cast in the wrapper (not per tile). Zero-padded
    # columns are discarded after the call (no bias, so they are harmless).
    x_t = jnp.pad(x.astype(jnp.float32).T, ((0, 0), (0, n_pad - N)))
    x_t = x_t.astype(operand_dtype)
    w_ops = [w.astype(operand_dtype) for w in weights]

    in_specs = [pl.BlockSpec((d_in, tile_n), lambda i: (0, i))]
    # Weights are constant across the grid: keep a single VMEM-resident copy
    # instead of a double-buffered per-step DMA.
    in_specs += [pl.BlockSpec(memory_space=pltpu.MemorySpace.VMEM)
                 for _ in w_ops]
    out_specs = pl.BlockSpec((d_out, tile_n), lambda i: (0, i))

    flops = 2 * N * sum(int(w.shape[0]) * int(w.shape[1]) for w in weights)
    bytes_accessed = int(
        x_t.size * x_t.dtype.itemsize
        + sum(w.size * w.dtype.itemsize for w in w_ops)
        + n_pad * d_out * 4)

    out_t = pl.pallas_call(
        _mlp_kernel,
        out_shape=jax.ShapeDtypeStruct((d_out, n_pad), jnp.float32),
        grid_spec=pltpu.PrefetchScalarGridSpec(
            num_scalar_prefetch=0,
            grid=grid,
            in_specs=in_specs,
            out_specs=out_specs,
        ),
        compiler_params=pltpu.CompilerParams(
            dimension_semantics=("parallel",)),
        cost_estimate=pl.CostEstimate(
            flops=flops, transcendentals=0, bytes_accessed=bytes_accessed),
    )(x_t, *w_ops)

    # Back to the module's [N, d_out] orientation (tiny slab: d_out rows).
    return out_t[:, :N].T


def init_mlp_weights(key, cfg):
    """Deterministic kaiming_uniform_(nonlinearity='relu') init, bias-free.

    PyTorch: bound = sqrt(2) * sqrt(3 / fan_in), weight ~ U(-bound, bound),
    weight shape [d_out, d_in] (same layout kept here).
    """
    dims = ([cfg["n_input_dims"]]
            + [cfg["n_neurons"]] * cfg["n_hidden_layers"]
            + [cfg["n_output_dims"]])
    weights = []
    for d_i, d_o in zip(dims[:-1], dims[1:]):
        key, sub = jax.random.split(key)
        bound = math.sqrt(2.0) * math.sqrt(3.0 / d_i)
        w = jax.random.uniform(sub, (d_o, d_i), jnp.float32,
                               minval=-bound, maxval=bound)
        weights.append(w)
    return weights


def mlp_reference(x, weights, operand_dtype=jnp.float32):
    """Pure-JAX reference. operand_dtype=bf16 mirrors the kernel's math."""
    h = x.astype(jnp.float32).astype(operand_dtype)
    for li, w in enumerate(weights):
        h = jnp.dot(h, w.T.astype(operand_dtype),
                    preferred_element_type=jnp.float32)
        if li < len(weights) - 1:
            h = jnp.maximum(h, 0.0).astype(operand_dtype)
    return h


if __name__ == "__main__":
    # TODO(synk): loss_scale backward-hook is training-only; forward pass is
    # unaffected, so it is not represented in the kernel.
    cfg = {
        "n_input_dims": 16,
        "n_neurons": 32,
        "n_hidden_layers": 2,
        "n_output_dims": 3,
    }
    key = jax.random.PRNGKey(0)
    k_w, k_x = jax.random.split(key)

    weights = init_mlp_weights(k_w, cfg)
    N = 1000  # deliberately NOT a multiple of the tile -> exercises cdiv + pad
    x = jax.random.normal(k_x, (N, cfg["n_input_dims"]), jnp.float32)

    # Small tile for the demo so the grid has >1 step; production default 4096.
    out = mlp_forward(x, weights, tile_n=512)
    out = jax.block_until_ready(out)

    assert out.shape == (N, cfg["n_output_dims"])
    assert out.dtype == jnp.float32

    # Exact-math check against a reference that mirrors the kernel's bf16
    # operands / f32 accumulation.
    ref_bf16 = mlp_reference(x, weights, operand_dtype=jnp.bfloat16)
    assert jnp.allclose(out, ref_bf16, atol=2e-3, rtol=2e-3), \
        "mismatch vs bf16-matched reference"

    # Loose semantic check against the full-f32 module math (bf16 operands are
    # a deliberate, flagged tolerance change).
    ref_f32 = mlp_reference(x, weights, operand_dtype=jnp.float32)
    assert jnp.allclose(out, ref_f32, atol=5e-2, rtol=5e-2), \
        "mismatch vs f32 reference"

    print("KERNEL_OK")
</pallas_src>

<mosaic_0001>
module attributes {stable_mosaic.version = 11 : i64} {
  func.func @_mlp_kernel(%arg0: i32, %arg1: memref<16x512xbf16, #tpu.memory_space<vmem>>, %arg2: memref<32x16xbf16, #tpu.memory_space<vmem>>, %arg3: memref<32x32xbf16, #tpu.memory_space<vmem>>, %arg4: memref<3x32xbf16, #tpu.memory_space<vmem>>, %arg5: memref<3x512xf32, #tpu.memory_space<vmem>>) attributes {dimension_semantics = [#tpu.dimension_semantics<parallel>], iteration_bounds = array<i64: 2>, scalar_prefetch = 0 : i64, scratch_operands = 0 : i64, tpu.core_type = #tpu.core_type<tc>, window_params = [{transform_indices = @transform_0, window_bounds = array<i64: 16, 512>}, {pipeline_mode = #tpu.pipeline_mode<synchronous>, transform_indices = @transform_1, window_bounds = array<i64: 32, 16>}, {pipeline_mode = #tpu.pipeline_mode<synchronous>, transform_indices = @transform_2, window_bounds = array<i64: 32, 32>}, {pipeline_mode = #tpu.pipeline_mode<synchronous>, transform_indices = @transform_3, window_bounds = array<i64: 3, 32>}, {transform_indices = @transform_4, window_bounds = array<i64: 3, 512>}]} {
    %c0 = arith.constant 0 : index
    %c0_0 = arith.constant 0 : index
    %0 = vector.load %arg1[%c0, %c0_0] : memref<16x512xbf16, #tpu.memory_space<vmem>>, vector<16x512xbf16>
    %c0_1 = arith.constant 0 : index
    %c0_2 = arith.constant 0 : index
    %1 = vector.load %arg2[%c0_1, %c0_2] : memref<32x16xbf16, #tpu.memory_space<vmem>>, vector<32x16xbf16>
    %cst = arith.constant dense<0.000000e+00> : vector<32x512xf32>
    %2 = tpu.matmul %1, %0, %cst {dimension_numbers = #tpu.dot_dimension_numbers<[1], [0], [0], [1], [0, 0, 1, 1], [], []>} : vector<32x16xbf16>, vector<16x512xbf16>, vector<32x512xf32> -> vector<32x512xf32>
    %cst_3 = arith.constant 0.000000e+00 : f32
    %3 = vector.broadcast %cst_3 : f32 to vector<32x512xf32>
    %4 = arith.maximumf %2, %3 : vector<32x512xf32>
    %5 = arith.truncf %4 : vector<32x512xf32> to vector<32x512xbf16>
    %c0_4 = arith.constant 0 : index
    %c0_5 = arith.constant 0 : index
    %6 = vector.load %arg3[%c0_4, %c0_5] : memref<32x32xbf16, #tpu.memory_space<vmem>>, vector<32x32xbf16>
    %cst_6 = arith.constant dense<0.000000e+00> : vector<32x512xf32>
    %7 = tpu.matmul %6, %5, %cst_6 {dimension_numbers = #tpu.dot_dimension_numbers<[1], [0], [0], [1], [0, 0, 1, 1], [], []>} : vector<32x32xbf16>, vector<32x512xbf16>, vector<32x512xf32> -> vector<32x512xf32>
    %cst_7 = arith.constant 0.000000e+00 : f32
    %8 = vector.broadcast %cst_7 : f32 to vector<32x512xf32>
    %9 = arith.maximumf %7, %8 : vector<32x512xf32>
    %10 = arith.truncf %9 : vector<32x512xf32> to vector<32x512xbf16>
    %c0_8 = arith.constant 0 : index
    %c0_9 = arith.constant 0 : index
    %11 = vector.load %arg4[%c0_8, %c0_9] : memref<3x32xbf16, #tpu.memory_space<vmem>>, vector<3x32xbf16>
    %cst_10 = arith.constant dense<0.000000e+00> : vector<3x512xf32>
    %12 = tpu.matmul %11, %10, %cst_10 {dimension_numbers = #tpu.dot_dimension_numbers<[1], [0], [0], [1], [0, 0, 1, 1], [], []>} : vector<3x32xbf16>, vector<32x512xbf16>, vector<3x512xf32> -> vector<3x512xf32>
    %c0_11 = arith.constant 0 : index
    %c0_12 = arith.constant 0 : index
    %13 = vector.load %arg5[%c0_11, %c0_12] : memref<3x512xf32, #tpu.memory_space<vmem>>, vector<3x512xf32>
    tpu.vector_store %arg5[%c0_11, %c0_12], %12 {strides = array<i32>} : memref<3x512xf32, #tpu.memory_space<vmem>>, vector<3x512xf32>,
    return
  }
  func.func @transform_0(%arg0: i32) -> (i32, i32) {
    %c0_i32 = arith.constant 0 : i32
    %c0_i32_0 = arith.constant 0 : i32
    return %c0_i32, %arg0 : i32, i32
  }
  func.func @transform_1(%arg0: i32) -> (i32, i32) {
    %c0_i32 = arith.constant 0 : i32
    %c0_i32_0 = arith.constant 0 : i32
    %c0_i32_1 = arith.constant 0 : i32
    return %c0_i32, %c0_i32_0 : i32, i32
  }
  func.func @transform_2(%arg0: i32) -> (i32, i32) {
    %c0_i32 = arith.constant 0 : i32
    %c0_i32_0 = arith.constant 0 : i32
    %c0_i32_1 = arith.constant 0 : i32
    return %c0_i32, %c0_i32_0 : i32, i32
  }
  func.func @transform_3(%arg0: i32) -> (i32, i32) {
    %c0_i32 = arith.constant 0 : i32
    %c0_i32_0 = arith.constant 0 : i32
    %c0_i32_1 = arith.constant 0 : i32
    return %c0_i32, %c0_i32_0 : i32, i32
  }
  func.func @transform_4(%arg0: i32) -> (i32, i32) {
    %c0_i32 = arith.constant 0 : i32
    %c0_i32_0 = arith.constant 0 : i32
    return %c0_i32, %arg0 : i32, i32
  }
}

</mosaic_0001>

<bundles_post_ra>
// kernel: tpu_custom_call.1
= control target key start
LH: loop header
LB: loop body
LE: loop exit
PB: predicated region body
PF: predicated region fallthrough
CT: control target
= control target key end

     0   :  { %9 = vsyncpa [#allocation3], 0  ;;  %s1049_s0 = inlined_call_operand.hbm [shape: bf16[16,1024], index: 0, kind: input, shape index: {}]   ;;  %s1050_s1 = inlined_call_operand.vmem [shape: bf16[32,16], index: 1, kind: input, shape index: {}]   ;;  %s1051_s2 = inlined_call_operand.vmem [shape: bf16[32,32], index: 2, kind: input, shape index: {}]   ;;  %s1052_s3 = inlined_call_operand.vmem [shape: bf16[3,32], index: 3, kind: input, shape index: {}]   ;;  %s1053_s4 = inlined_call_operand.hbm [shape: f32[3,1024], index: 4, kind: output, shape index: {}]  }
   0x1   :  { %11 = vsyncpa [#allocation3 + $0x1], 0 }
   0x2   :  { %12 = vsyncpa [#allocation4], 0 }
   0x3   :  { %14 = vsyncpa [#allocation4 + $0x1], 0  ;;  %s894_s15 = smov 0   ;;  %s896_s16 = smov 0  }
   0x4   :  { %s898_s17 = smov 0   ;;  %s900_s18 = smov 0  }
   0x5 LB: > { %s915_s19 = sadd.s32 4294967295, %s864_s18   ;;  %s643_s20 = sadd.s32 4294967294, %s864_s18   ;;  %s864_s18 = sphi %s900_s18, %s1062_s18   ;;  %s860_s17 = sphi %s898_s17, %s1061_s17   ;;  %s856_s16 = sphi %s896_s16, %s1060_s16   ;;  %s852_s15 = sphi %s894_s15, %s1059_s15  }
   0x6   : > { %s919_s21 = sadd.s32 1, %s864_s18   ;;  %s27_s22 = sadd.s32 1, %s860_s17 }
   0x7   : > { %s24_s23 = ssub.s32 %s864_s18, %s919_s21  ;;  %p34_p0 = scmp.ne.s32.totalorder %s860_s17, %s856_s16 }
   0x8   : > { %p25_p1 = scmp.eq.s32.totalorder %s24_s23, 0  ;;  %p35_p2 = scmp.eq.s32.totalorder %s864_s18, 0 }
   0x9   : > { %p40_p3 = scmp.ne.s32.totalorder %s856_s16, %s852_s15  ;;  %p41_p4 = scmp.eq.s32.totalorder %s915_s19, 0 }
   0xa   : > { %s931_s24 = scalar_select %p25_p1, %s860_s17, %s27_s22  }
   0xb   : > { %p933_p5 = por %p35_p2, %p34_p0  ;;  %p937_p6 = por %p41_p4, %p40_p3 }
   0xc   : > { %p127_p7 = scmp.eq.s32.totalorder %s915_s19, 1  ;;  %p133_p8 = scmp.eq.s32.totalorder %s643_s20, 1 }
   0xd   : > { %p645_p9 = scmp.ge.s32.totalorder %s864_s18, 2  ;;  %p731_p10 = scmp.lt.s32.totalorder %s864_s18, 2 }
   0xe   : > { %p944_p11 = por %p127_p7, %p34_p0  ;;  %p948_p12 = por %p133_p8, %p40_p3 }
   0xf   : > { %s162_s29 = sand.u32 1, %s860_s17   ;;  %s709_s30 = sshll.u32 %s864_s18, 4 }
  0x10   : > { %s646_s5 = sshll.u32 %s162_s29, 5  ;;  %s171_s8 = scalar_lea.hbm %s1049_s0, %s709_s30 }
  0x11   : > { %s172_s9 = sshll.u32 %s171_s8, 4  ;;  %s166_s10 = scalar_lea.vmem [#allocation2], %s646_s5  ;;  %s173_s9 = int_to_ptr.hbm [resolvable:$true] %s172_s9 }
  0x12   : > { %s174_s11 = sshll.u32 %s166_s10, 4  ;;  %p959_p13 = pnand %p731_p10, %p933_p5  ;;  %s175_s11 = int_to_ptr.vmem [resolvable:$true] %s174_s11 }
  0x13   : > { %p649_p0 = scmp.ge.s32.totalorder %s864_s18, 1  ;;  %s163_s13 = scalar_lea.sflag [#allocation3], %s162_s29 }
  0x14   : > { %s768_s14 = sshra.s32 %s173_s9, 4  ;;  %p772_p2 = pneg %p959_p13  ;;  %s769_s14 = int_to_ptr.hbm [resolvable:$true] %s768_s14 }
  0x15   : > { %s770_s20 = scalar_lea.hbm %s769_s14, 32  ;;  %s775_s30 = scalar_lea.hbm %s1049_s0, 64 }
  0x16   : > { %p771_p1 = scmp.ne.s32.totalorder %s769_s14, %s770_s20  ;;  %p776_p5 = scmp.lt.s32.totalorder %s769_s14, %s1049_s0 }
  0x17   : > { %p777_p7 = scmp.lt.s32.totalorder %s775_s30, %s770_s20 }
  0x18   : > { %p773_p3 = pnand %p772_p2, %p771_p1 }
  0x19   : > { %p778_p8 = por %p777_p7, %p776_p5 }
  0x1a   : > { %p774_p4 = pneg %p773_p3 }
  0x1c   : > { %p779_p10 = pnand %p778_p8, %p774_p4 }
  0x1e   : > { %782 = shalt.err (!%p779_p10)
}
  0x1f   : > { %s866_s29 = smov 512   ;;  %s867_s6 = smov 256  }
  0x20   : > { %s868_s7 = smov 16   ;;  %p182_p1 = scmp.lt.s32.totalorder %s864_s18, 3 }
  0x21   : > { %726 = dma.hbm_to_vmem [thread:$0]  (!%p959_p13), %s173_s9, 512, %s175_s11, %s163_s13, %s866_s29, %s867_s6, %s868_s7  }
  0x22   : > { %p183_p2 = pnand %p649_p0, %p182_p1 }
  0x23   : > { %s978_s8 = sand.u32 (!%p183_p2), 1, %s856_s16  }
  0x24   : > { %186 = sbr.rel (%p183_p2) target bundleno = 525 (0x20d), region = 36  ;;  %s650_s10 = sshll.u32 (!%p183_p2), %s978_s8, 5 }
  0x25   : > { %s189_s14 = scalar_lea.sflag (!%p183_p2), [#allocation3], %s978_s8  ;;  %s192_s20 = scalar_lea.vmem (!%p183_p2), [#allocation2], %s650_s10 }
  0x29   : > { %843 = dma.done.wait (%p937_p6), %s189_s14, 512  }
  0x2a   : > { %845 = vsyncadd (%p937_p6), %s189_s14, 4294966784  ;;  %v662_v0 = vld [vmem:[%s192_s20] sm:$0xf]  ;;  %v712_v1 = vld [vmem:[%s192_s20 + $0xc] sm:$0xf0]  ;;  %vm259_vm0 = vcmask 130048  }
  0x2b   : > { %v710_v2 = vld [vmem:[%s192_s20 + $0x4] sm:$0xf]  ;;  %v663_v3 = vor.u32 %v712_v1, %v662_v0  ;;  %v664_v4 = vld [vmem:[%s192_s20 + $0x10] sm:$0xf0]  ;;  %v670_v5 = vld [vmem:[%s192_s20 + $0x8] sm:$0xf] }
  0x2c   : > { %v713_v6 = vld [vmem:[%s192_s20 + $0x14] sm:$0xf0]  ;;  %v667_v7 = vor.u32 %v710_v2, %v664_v4  ;;  %v711_v9 = vld [vmem:[%s192_s20 + $0xc] sm:$0xf]  ;;  %v672_v10 = vld [vmem:[%s192_s20 + $0x18] sm:$0xf0] }
  0x2d   : > { %v671_v8 = vor.u32 %v713_v6, %v670_v5  ;;  %v714_v11 = vld [vmem:[%s1050_s1] sm:$0xff]  ;;  %273 = vmatpush.bf16.msra.mxu0 %v663_v3  ;;  %v675_v12 = vor.u32 %v711_v9, %v672_v10  ;;  %v715_v13 = vld [vmem:[%s1050_s1 + $0x8] sm:$0xff]  ;;  %vm380_vm1 = vcmask 261120   ;;  %s651_s29 = sshll.u32 %s978_s8, 4  ;;  %vm549_vm2 = vcmask 1043456   ;;  %s718_s7 = sshll.u32 %s915_s19, 4 }
  0x2e   : > { %292 = vmatpush.bf16.msra.mxu1 %v667_v7  ;;  %v716_v44 = vld [vmem:[%s1051_s2] sm:$0xff]  ;;  %v717_v55 = vld [vmem:[%s1051_s2 + $0x8] sm:$0xff]  ;;  %s217_s6 = scalar_lea.vmem [#allocation5], %s651_s29  ;;  %s568_s20 = scalar_lea.hbm %s1053_s4, %s718_s7 }
  0x2f   : > { %311 = vmatpush.bf16.msra.mxu2 %v671_v8  ;;  %330 = vmatpush.bf16.msra.mxu3 %v675_v12  ;;  %s570_s9 = sshll.u32 %s217_s6, 4  ;;  %s572_s11 = sshll.u32 %s568_s20, 4  ;;  %s571_s9 = int_to_ptr.vmem [resolvable:$true] %s570_s9  ;;  %s573_s11 = int_to_ptr.hbm [resolvable:$true] %s572_s11 }
  0x30   : > { %676 = vmatmul.msk.bf16.vlgmr.msra.gmra.mxu0 %vm259_vm0, %v714_v11  ;;  %s557_s26 = scalar_lea.sflag [#allocation4], %s978_s8  ;;  %s812_s12 = sshra.s32 %s573_s11, 4  ;;  %s813_s12 = int_to_ptr.hbm [resolvable:$true] %s812_s12 }
  0x31   : > { %678 = vmatmul.msk.bf16.vlgmr.msra.gmra.mxu1 %vm259_vm0, %v714_v11  ;;  %s814_s13 = scalar_lea.hbm %s813_s12, 16  ;;  %s818_s23 = scalar_lea.hbm %s1053_s4, 32 }
  0x32   : > { %680 = vmatmul.msk.bf16.vlgmr.msra.gmra.mxu2 %vm259_vm0, %v714_v11  ;;  %682 = vmatmul.msk.bf16.vlgmr.msra.gmra.mxu3 %vm259_vm0, %v714_v11  ;;  %p815_p6 = scmp.ne.s32.totalorder %s813_s12, %s814_s13  ;;  %p819_p3 = scmp.lt.s32.totalorder %s813_s12, %s1053_s4 }
  0x33   : > { %p820_p4 = scmp.lt.s32.totalorder %s818_s23, %s814_s13 }
  0x34   : > { %p816_p13 = pnand %p815_p6, %p944_p11 }
  0x35   : > { %p821_p5 = por %p820_p4, %p819_p3 }
  0x36   : > { %p817_p0 = pneg %p816_p13 }
  0x38   : > { %p822_p7 = pnand %p821_p5, %p817_p0 }
  0x40   : > { %677 = vmatmul.msk.bf16.gmra.mxu0 %vm259_vm0, %v715_v13 }
  0x41   : > { %679 = vmatmul.msk.bf16.gmra.mxu1 %vm259_vm0, %v715_v13 }
  0x42   : > { %681 = vmatmul.msk.bf16.gmra.mxu2 %vm259_vm0, %v715_v13  ;;  %683 = vmatmul.msk.bf16.gmra.mxu3 %vm259_vm0, %v715_v13 }
  0xad   : > { %v275_v14 = vpop.f32.mrf.mxu0 }
  0xae   : > { %v294_v15 = vpop.f32.mrf.mxu1  ;;  %v342_v32 = vmax.f32 %v275_v14, 0.0 }
  0xaf   : > { %v343_v35 = vmax.f32 %v294_v15, 0.0 }
  0xb5   : > { %v313_v16 = vpop.f32.mrf.mxu2  ;;  %v332_v17 = vpop.f32.mrf.mxu3 }
  0xb6   : > { %v277_v18 = vpop.f32.mrf.mxu0  ;;  %v296_v19 = vpop.f32.mrf.mxu1  ;;  %v344_v51 = vmax.f32 %v313_v16, 0.0  ;;  %v345_v52 = vmax.f32 %v332_v17, 0.0 }
  0xb7   : > { %v346_v33 = vmax.f32 %v277_v18, 0.0  ;;  %v347_v36 = vmax.f32 %v296_v19, 0.0  ;;  %v487_v18 = vld [vmem:[%s1052_s3] sm:$0x3] }
  0xb9   : > { %v358_v39 = vpack.c.bf16 %v346_v33, %v342_v32  ;;  %v359_v43 = vpack.c.bf16 %v347_v36, %v343_v35 }
  0xbd   : > { %v315_v20 = vpop.f32.mrf.mxu2  ;;  %v334_v21 = vpop.f32.mrf.mxu3 }
  0xbe   : > { %v280_v22 = vpop.f32.mrf.mxu0  ;;  %v299_v23 = vpop.f32.mrf.mxu1  ;;  %v348_v47 = vmax.f32 %v315_v20, 0.0  ;;  %v349_v49 = vmax.f32 %v334_v21, 0.0 }
  0xbf   : > { %v350_v24 = vmax.f32 %v280_v22, 0.0  ;;  %v351_v26 = vmax.f32 %v299_v23, 0.0 }
  0xc0   : > { %v360_v53 = vpack.c.bf16 %v348_v47, %v344_v51  ;;  %v361_v54 = vpack.c.bf16 %v349_v49, %v345_v52 }
  0xc5   : > { %v318_v25 = vpop.f32.mrf.mxu2  ;;  %v337_v27 = vpop.f32.mrf.mxu3 }
  0xc6   : > { %v282_v28 = vpop.f32.mrf.mxu0  ;;  %v301_v30 = vpop.f32.mrf.mxu1  ;;  %v352_v40 = vmax.f32 %v318_v25, 0.0  ;;  %v353_v45 = vmax.f32 %v337_v27, 0.0 }
  0xc7   : > { %v354_v29 = vmax.f32 %v282_v28, 0.0  ;;  %v355_v31 = vmax.f32 %v301_v30, 0.0 }
  0xc9   : > { %v362_v34 = vpack.c.bf16 %v354_v29, %v350_v24  ;;  %v363_v37 = vpack.c.bf16 %v355_v31, %v351_v26 }
  0xcb   : > { %393 = vmatpush.bf16.msrb.mxu0 %v362_v34  ;;  %412 = vmatpush.bf16.msrb.mxu1 %v363_v37 }
  0xcd   : > { %v320_v38 = vpop.f32.mrf.mxu2  ;;  %v339_v42 = vpop.f32.mrf.mxu3 }
  0xce   : > { %v356_v41 = vmax.f32 %v320_v38, 0.0  ;;  %v357_v46 = vmax.f32 %v339_v42, 0.0 }
  0xcf   : > { %394 = vmatpush.bf16.msrb.mxu0 %v358_v39  ;;  %413 = vmatpush.bf16.msrb.mxu1 %v359_v43 }
  0xd0   : > { %v364_v48 = vpack.c.bf16 %v356_v41, %v352_v40  ;;  %v365_v50 = vpack.c.bf16 %v357_v46, %v353_v45 }
  0xd2   : > { %431 = vmatpush.bf16.msrb.mxu2 %v364_v48  ;;  %692 = vmatmul.msk.bf16.vlgmr.msrb.gmra.mxu0 %vm380_vm1, %v716_v44 }
  0xd3   : > { %450 = vmatpush.bf16.msrb.mxu3 %v365_v50  ;;  %694 = vmatmul.msk.bf16.vlgmr.msrb.gmra.mxu1 %vm380_vm1, %v716_v44 }
  0xd6   : > { %432 = vmatpush.bf16.msrb.mxu2 %v360_v53 }
  0xd7   : > { %451 = vmatpush.bf16.msrb.mxu3 %v361_v54 }
  0xd9   : > { %696 = vmatmul.msk.bf16.vlgmr.msrb.gmra.mxu2 %vm380_vm1, %v716_v44 }
  0xda   : > { %698 = vmatmul.msk.bf16.vlgmr.msrb.gmra.mxu3 %vm380_vm1, %v716_v44 }
  0xe2   : > { %693 = vmatmul.msk.bf16.gmra.mxu0 %vm380_vm1, %v717_v55 }
  0xe3   : > { %695 = vmatmul.msk.bf16.gmra.mxu1 %vm380_vm1, %v717_v55 }
  0xe9   : > { %697 = vmatmul.msk.bf16.gmra.mxu2 %vm380_vm1, %v717_v55 }
  0xea   : > { %699 = vmatmul.msk.bf16.gmra.mxu3 %vm380_vm1, %v717_v55 }
 0x14f   : > { %v396_v56 = vpop.f32.mrf.mxu0 }
 0x150   : > { %v415_v57 = vpop.f32.mrf.mxu1  ;;  %v463_v8 = vmax.f32 %v396_v56, 0.0 }
 0x151   : > { %v464_v11 = vmax.f32 %v415_v57, 0.0 }
 0x157   : > { %v398_v58 = vpop.f32.mrf.mxu0 }
 0x158   : > { %v417_v59 = vpop.f32.mrf.mxu1  ;;  %v467_v9 = vmax.f32 %v398_v58, 0.0 }
 0x159   : > { %v468_v12 = vmax.f32 %v417_v59, 0.0 }
 0x15a   : > { %v479_v16 = vpack.c.bf16 %v467_v9, %v463_v8 }
 0x15b   : > { %v480_v17 = vpack.c.bf16 %v468_v12, %v464_v11 }
 0x15c   : > { %v434_v60 = vpop.f32.mrf.mxu2 }
 0x15d   : > { %v453_v61 = vpop.f32.mrf.mxu3  ;;  %v465_v29 = vmax.f32 %v434_v60, 0.0 }
 0x15e   : > { %v466_v30 = vmax.f32 %v453_v61, 0.0 }
 0x15f   : > { %v401_v62 = vpop.f32.mrf.mxu0 }
 0x160   : > { %v420_v63 = vpop.f32.mrf.mxu1  ;;  %v471_v2 = vmax.f32 %v401_v62, 0.0 }
 0x161   : > { %v472_v3 = vmax.f32 %v420_v63, 0.0 }
 0x164   : > { %v436_v0 = vpop.f32.mrf.mxu2 }
 0x165   : > { %v455_v1 = vpop.f32.mrf.mxu3  ;;  %v469_v25 = vmax.f32 %v436_v0, 0.0 }
 0x166   : > { %v470_v27 = vmax.f32 %v455_v1, 0.0 }
 0x167   : > { %v403_v4 = vpop.f32.mrf.mxu0  ;;  %v481_v31 = vpack.c.bf16 %v469_v25, %v465_v29 }
 0x168   : > { %v475_v5 = vmax.f32 %v403_v4, 0.0  ;;  %v422_v6 = vpop.f32.mrf.mxu1  ;;  %v482_v32 = vpack.c.bf16 %v470_v27, %v466_v30 }
 0x169   : > { %v476_v7 = vmax.f32 %v422_v6, 0.0 }
 0x16a   : > { %v483_v10 = vpack.c.bf16 %v475_v5, %v471_v2 }
 0x16b   : > { %v484_v13 = vpack.c.bf16 %v476_v7, %v472_v3 }
 0x16c   : > { %v439_v14 = vpop.f32.mrf.mxu2  ;;  %497 = vmatpush.bf16.msra.mxu0 %v483_v10 }
 0x16d   : > { %v458_v15 = vpop.f32.mrf.mxu3  ;;  %510 = vmatpush.bf16.msra.mxu1 %v484_v13  ;;  %v473_v20 = vmax.f32 %v439_v14, 0.0 }
 0x16e   : > { %v474_v23 = vmax.f32 %v458_v15, 0.0 }
 0x170   : > { %498 = vmatpush.bf16.msra.mxu0 %v479_v16 }
 0x171   : > { %511 = vmatpush.bf16.msra.mxu1 %v480_v17 }
 0x173   : > { %700 = vmatmul.msk.bf16.vlgmr.msra.gmra.mxu0 %vm380_vm1, %v487_v18 }
 0x174   : > { %v441_v19 = vpop.f32.mrf.mxu2  ;;  %701 = vmatmul.msk.bf16.vlgmr.msra.gmra.mxu1 %vm380_vm1, %v487_v18 }
 0x175   : > { %v477_v21 = vmax.f32 %v441_v19, 0.0  ;;  %v460_v22 = vpop.f32.mrf.mxu3 }
 0x176   : > { %v478_v24 = vmax.f32 %v460_v22, 0.0 }
 0x177   : > { %v485_v26 = vpack.c.bf16 %v477_v21, %v473_v20 }
 0x178   : > { %v486_v28 = vpack.c.bf16 %v478_v24, %v474_v23 }
 0x179   : > { %523 = vmatpush.bf16.msra.mxu2 %v485_v26 }
 0x17a   : > { %536 = vmatpush.bf16.msra.mxu3 %v486_v28 }
 0x17d   : > { %524 = vmatpush.bf16.msra.mxu2 %v481_v31 }
 0x17e   : > { %537 = vmatpush.bf16.msra.mxu3 %v482_v32 }
 0x180   : > { %702 = vmatmul.msk.bf16.vlgmr.msra.gmra.mxu2 %vm380_vm1, %v487_v18 }
 0x181   : > { %703 = vmatmul.msk.bf16.vlgmr.msra.gmra.mxu3 %vm380_vm1, %v487_v18 }
 0x1f0   : > { %v500_v33 = vpop.f32.mrf.mxu0 }
 0x1f1   : > { %v513_v34 = vpop.f32.mrf.mxu1 }
 0x1f2   : > { %v547_v35 = vrot.slane %v513_v34, 4 }
 0x1f4   : > { %v550_v36 = vsel %vm549_vm2, %v500_v33, %v547_v35 }
 0x1f5   : > { %554 = vst [vmem:[%s217_s6] sm:$0x77] %v550_v36 }
 0x1f8   : > { %v502_v37 = vpop.f32.mrf.mxu0 }
 0x1f9   : > { %v515_v38 = vpop.f32.mrf.mxu1 }
 0x203   : > { %v526_v39 = vpop.f32.mrf.mxu2 }
 0x204   : > { %v539_v40 = vpop.f32.mrf.mxu3 }
 0x205   : > { %v548_v41 = vrot.slane %v539_v40, 4 }
 0x207   : > { %v551_v42 = vsel %vm549_vm2, %v526_v39, %v548_v41 }
 0x208   : > { %555 = vst [vmem:[%s217_s6 + $0x8] sm:$0x77] %v551_v42 }
 0x209   : > { %825 = shalt.err (!%p822_p7)
}
 0x20a   : > { %721 = dma.vmem_to_hbm [thread:$0]  (%p944_p11), %s571_s9, 256, %s573_s11, %s557_s26  }
 0x20b   : > { %v528_v43 = vpop.f32.mrf.mxu2 }
 0x20c   : > { %v541_v44 = vpop.f32.mrf.mxu3 }
 0x20d PF: > { %s584_s8 = sand.u32 1, %s852_s15   ;;  %p728_p8 = pnand %p645_p9, %p948_p12 }
 0x20e   : > { %s585_s5 = scalar_lea.sflag [#allocation4], %s584_s8 }
 0x20f   : > { %p729_p10 = pneg %p728_p8 }
 0x211   : > { %847 = dma.done.wait (%p729_p10), %s585_s5, 256  }
 0x212   : > { %849 = vsyncadd (%p729_p10), %s585_s5, 4294967040  ;;  %p17_p11 = scmp.ge.s32.totalorder %s919_s21, 4   ;;  %s1059_s15 = smov %s856_s16 }
 0x213   : > { %s1060_s16 = smov %s860_s17  ;;  %s1061_s17 = smov %s931_s24 }
 0x214   : > { %s1062_s18 = smov %s919_s21  ;;  %19 = sbr.rel (!%p17_p11) target bundleno = 5 (0x5), region = 81 }
 0x219   :  { %591 = vsyncpa [#allocation3], 1 }
 0x21a   :  { %593 = vsyncpa [#allocation3 + $0x1], 1 }
 0x21b   :  { %594 = vsyncpa [#allocation4], 1 }
 0x21c   :  { %596 = vsyncpa [#allocation4 + $0x1], 1 }

</bundles_post_ra>
